<compile_context>
chip_gen: v7x
topology: tpu7x:2x2x1
jax: 0.10.0
libtpu: 0.0.40
codegen_flags: <defaults>
</compile_context>

<pallas_src>
import functools

import jax
import jax.numpy as jnp
from jax.experimental import pallas as pl
from jax.experimental.pallas import tpu as pltpu

_MB = 1 << 20


def _round_up(x, m):
    return (x + m - 1) // m * m


# ----------------------------------------------------------------------------
# Fused 3x3 stride-1 conv kernel (tap accumulation, no im2col materialization):
#   y = conv3x3_same(relu(x) [optional], W_std * scale)  [+ residual]
# The halo-padded flat (rows, Cin) activation lives in HBM; each grid step
# DMAs (TM + 2*HALO) rows into a double-buffered VMEM window (prefetching the
# next tile), ReLUs it once, and runs one (TM, 3*CI)x(3*CI, CO) MXU matmul per
# kernel row with per-tap border masking folded into the operand build.
# ----------------------------------------------------------------------------
def _conv3x3_kernel(*refs, TM, BUF, HALO, H, W, CI, CO, relu_in, has_res, NM):
    if has_res:
        x_hbm, w_ref, res_ref, o_ref, xbuf, rbuf, sem = refs
    else:
        x_hbm, w_ref, o_ref, xbuf, rbuf, sem = refs
        res_ref = None

    m = pl.program_id(1)                      # row-tile index (grid = (nc, nm))

    def window_copy(tile, slot):
        row0 = tile * TM
        if not isinstance(row0, int):
            row0 = pl.multiple_of(row0, 8)    # TM is a multiple of 8
        return pltpu.make_async_copy(x_hbm.at[pl.ds(row0, BUF)],
                                     xbuf.at[slot], sem.at[slot])

    slot = m % 2

    @pl.when(m == 0)                          # prime slot 0 for this CO pass
    def _():
        window_copy(0, 0).start()

    if NM > 1:                                # prefetch next tile's window
        @pl.when(m + 1 < NM)
        def _():
            window_copy(m + 1, 1 - slot).start()

    window_copy(m, slot).wait()

    # Single ReLU pass over the whole halo'd window (not once per tap).
    xw = xbuf[slot]
    if relu_in:
        xw = jnp.maximum(xw, 0.0)
    rbuf[...] = xw

    # (h, w) coordinate of every output row in this tile (for border masks).
    rows = m * TM + jax.lax.broadcasted_iota(jnp.int32, (TM, 1), 0)
    hh = (rows // W) % H
    ww = rows % W

    di_list = [1] if H == 1 else [0, 1, 2]
    dj_list = [1] if W == 1 else [0, 1, 2]
    KJ = len(dj_list)

    acc = jnp.zeros((TM, CO), jnp.float32)
    for g, di in enumerate(di_list):
        parts = []
        for dj in dj_list:
            off = HALO + (di - 1) * W + (dj - 1)       # static buffer offset
            a = rbuf[pl.ds(off, TM), :]
            conds = []
            if di == 0:
                conds.append(hh >= 1)
            if di == 2:
                conds.append(hh < H - 1)
            if dj == 0:
                conds.append(ww >= 1)
            if dj == 2:
                conds.append(ww < W - 1)
            if conds:
                valid = conds[0]
                for c in conds[1:]:
                    valid = jnp.logical_and(valid, c)
                a = a * valid.astype(a.dtype)          # (TM,1) broadcast mask
            parts.append(a)
        opnd = parts[0] if len(parts) == 1 else jnp.concatenate(parts, axis=1)
        w_g = w_ref[pl.ds(g * KJ * CI, KJ * CI), :]    # (KJ*CI, CO) static view
        acc = acc + jnp.dot(opnd, w_g, preferred_element_type=jnp.float32)

    if has_res:
        acc = acc + res_ref[...].astype(jnp.float32)
    o_ref[...] = acc.astype(o_ref.dtype)


def conv3x3_s1(x, cp, *, relu_in, extra_scale=1.0, residual=None):
    """Fused NF-style 3x3 stride-1 'same' convolution (+ optional residual)."""
    N, H, W, CI = x.shape
    w_std = _standardize(cp["w"], cp["g"], extra_scale)          # (CO,CI,3,3) f32
    CO = w_std.shape[0]

    # Only taps that can ever contribute on an HxW map (drop dead taps when
    # H==1 / W==1); ordered (di-major, dj) to match the in-kernel groups.
    di_list = [1] if H == 1 else [0, 1, 2]
    dj_list = [1] if W == 1 else [0, 1, 2]
    w_hwio = jnp.transpose(w_std, (2, 3, 1, 0))                  # (3,3,CI,CO)
    w_mat = jnp.concatenate(
        [w_hwio[di, dj] for di in di_list for dj in dj_list],
        axis=0).astype(jnp.bfloat16)                             # (KTOT, CO)
    KTOT = len(di_list) * len(dj_list) * CI

    R = N * H * W
    base_tm = 512 if R > 2048 else 256
    tm = max(8, min(base_tm, _round_up(R, 8)))       # clamp tile to real size
    nm = -(-R // tm)
    halo = _round_up(W + 1, 8)
    buf = tm + 2 * halo

    x_flat = x.reshape(R, CI).astype(jnp.bfloat16)
    x_pad = jnp.pad(x_flat, ((halo, nm * tm + halo - R), (0, 0)))

    # Split CO across a second 'parallel' axis when the row grid is tiny so
    # v7x's second TensorCore has an independent unit of work.
    if CO >= 512 and nm <= 2 and CO % 256 == 0:
        co_blk = 256
    else:
        co_blk = CO
    nc = CO // co_blk

    in_specs = [pl.BlockSpec(memory_space=pl.ANY),               # raw HBM ref
                pl.BlockSpec((KTOT, co_blk), lambda c, m: (0, c))]
    inputs = [x_pad, w_mat]
    if residual is not None:
        res = residual.reshape(R, CO).astype(jnp.bfloat16)
        res = jnp.pad(res, ((0, nm * tm - R), (0, 0)))
        in_specs.append(pl.BlockSpec((tm, co_blk), lambda c, m: (m, c)))
        inputs.append(res)

    kernel = functools.partial(
        _conv3x3_kernel, TM=tm, BUF=buf, HALO=halo, H=H, W=W, CI=CI, CO=co_blk,
        relu_in=relu_in, has_res=residual is not None, NM=nm)

    # Right-sized VMEM budget: double-buffered weights / IO tiles + the
    # double-buffered activation window + working set, with 2x headroom.
    w_b = KTOT * co_blk * 2
    io_b = tm * co_blk * 2
    res_b = io_b if residual is not None else 0
    win_b = (2 * buf * CI + buf * CI) * 2
    wrk_b = tm * (len(dj_list) * CI) * 2 + tm * co_blk * 4
    vmem_limit = int(min(40 * _MB,
                         max(16 * _MB,
                             2 * (w_b + io_b + res_b) + win_b + 2 * wrk_b + 4 * _MB)))

    flops = 2 * nc * nm * tm * KTOT * co_blk
    bytes_accessed = 2 * (nc * nm * buf * CI + nm * tm * CO + KTOT * CO
                          + (nm * tm * CO if residual is not None else 0))
    out = pl.pallas_call(
        kernel,
        out_shape=jax.ShapeDtypeStruct((nm * tm, CO), jnp.bfloat16),
        grid_spec=pltpu.PrefetchScalarGridSpec(
            num_scalar_prefetch=0,
            grid=(nc, nm),
            in_specs=in_specs,
            out_specs=pl.BlockSpec((tm, co_blk), lambda c, m: (m, c)),
            scratch_shapes=[pltpu.VMEM((2, buf, CI), jnp.bfloat16),   # DMA window
                            pltpu.VMEM((buf, CI), jnp.bfloat16),      # ReLU'd window
                            pltpu.SemaphoreType.DMA((2,))]),
        compiler_params=pltpu.CompilerParams(
            # Row axis carries the manual prefetch chain -> 'arbitrary';
            # the CO axis is independent -> 'parallel' (megacore on v7x).
            dimension_semantics=("parallel", "arbitrary"),
            vmem_limit_bytes=vmem_limit),
        cost_estimate=pl.CostEstimate(flops=int(flops), transcendentals=0,
                                      bytes_accessed=int(bytes_accessed)),
    )(*inputs)
    return out[:R].reshape(N, H, W, CO)


# ----------------------------------------------------------------------------
# Tiled bf16 matmul kernel (full-extent K block, f32 MXU accumulation).
# Used for 1x1 convs, the FC layer and the im2col path of stride-2 convs.
# ----------------------------------------------------------------------------
def _matmul_kernel(a_ref, b_ref, o_ref):
    o_ref[...] = jnp.dot(a_ref[...], b_ref[...],
                         preferred_element_type=jnp.float32).astype(o_ref.dtype)


def pallas_matmul(a, b, out_dtype=jnp.bfloat16):
    M, K = a.shape
    K2, N = b.shape
    assert K == K2
    a = a.astype(jnp.bfloat16)
    b = b.astype(jnp.bfloat16)

    if M <= 512:
        mb, Mp = M, M                      # full-extent M block, no padding
    else:
        mb = 512
        Mp = _round_up(M, mb)
        a = jnp.pad(a, ((0, Mp - M), (0, 0)))
    if N <= 512:
        nb, Np = N, N                      # full-extent N block, no padding
    else:
        nb = 256
        Np = _round_up(N, nb)
        b = jnp.pad(b, ((0, 0), (0, Np - N)))

    tile_b = 2 * (mb * K + K * nb + mb * nb) * 2 + mb * nb * 4
    vmem_limit = int(min(40 * _MB, max(16 * _MB, 2 * tile_b)))

    out = pl.pallas_call(
        _matmul_kernel,
        out_shape=jax.ShapeDtypeStruct((Mp, Np), out_dtype),
        grid_spec=pltpu.PrefetchScalarGridSpec(
            num_scalar_prefetch=0,
            grid=(Mp // mb, Np // nb),
            in_specs=[pl.BlockSpec((mb, K), lambda i, j: (i, 0)),
                      pl.BlockSpec((K, nb), lambda i, j: (0, j))],
            out_specs=pl.BlockSpec((mb, nb), lambda i, j: (i, j))),
        compiler_params=pltpu.CompilerParams(
            dimension_semantics=("parallel", "parallel"),
            vmem_limit_bytes=vmem_limit),
        cost_estimate=pl.CostEstimate(
            flops=int(2 * Mp * Np * K), transcendentals=0,
            bytes_accessed=int(2 * (Mp * K + K * Np + Mp * Np))),
    )(a, b)
    if (Mp, Np) != (M, N):
        out = out[:M, :N]
    return out


# ----------------------------------------------------------------------------
# Global average pool kernel (small tensors; single block, lane-dense C).
# ----------------------------------------------------------------------------
def _gap_kernel(x_ref, o_ref):
    o_ref[...] = jnp.mean(x_ref[...].astype(jnp.float32), axis=1)


def global_avg_pool(x):
    N, H, W, C = x.shape
    x3 = x.reshape(N, H * W, C)
    return pl.pallas_call(
        _gap_kernel,
        out_shape=jax.ShapeDtypeStruct((N, C), jnp.float32))(x3)


# ----------------------------------------------------------------------------
# ScaledStdConv2d weight standardization (timm-style), with the NF beta/alpha
# scalar folded into the weights so no separate elementwise pass is needed.
# ----------------------------------------------------------------------------
def _standardize(w, gain, extra_scale, eps=1e-6, gamma=1.0):
    co = w.shape[0]
    fan_in = w.shape[1] * w.shape[2] * w.shape[3]
    w2 = w.reshape(co, fan_in).astype(jnp.float32)
    mean = jnp.mean(w2, axis=1, keepdims=True)
    var = jnp.var(w2, axis=1, keepdims=True)
    scale = gamma * fan_in ** -0.5 * extra_scale
    w_std = (w2 - mean) * jax.lax.rsqrt(var + eps)
    w_std = w_std * (gain.astype(jnp.float32).reshape(co, 1) * scale)
    return w_std.reshape(w.shape)


# ----------------------------------------------------------------------------
# Stride-2 / stem convs via light im2col (output is 1/4 resolution, so the
# patch tensor is only ~(k*k/4)x the input) feeding the bf16 matmul kernel.
# TODO(synk): port the tap-accumulation kernel to stride 2 to remove this
# im2col materialization entirely (modest bandwidth win, mainly on v5e).
# ----------------------------------------------------------------------------
def conv_im2col(x, cp, *, k, stride, pad, extra_scale=1.0):
    N, H, W, CI = x.shape
    w_std = _standardize(cp["w"], cp["g"], extra_scale)
    CO = w_std.shape[0]
    w_mat = jnp.transpose(w_std, (2, 3, 1, 0)).reshape(k * k * CI, CO)

    xp = x.astype(jnp.bfloat16)
    if pad > 0:
        xp = jnp.pad(xp, ((0, 0), (pad, pad), (pad, pad), (0, 0)))
    Hp, Wp = H + 2 * pad, W + 2 * pad
    Ho = (Hp - k) // stride + 1
    Wo = (Wp - k) // stride + 1
    views = []
    for i in range(k):
        for j in range(k):
            views.append(xp[:, i:i + stride * Ho:stride,
                            j:j + stride * Wo:stride, :])
    cols = jnp.stack(views, axis=3).reshape(N * Ho * Wo, k * k * CI)
    y = pallas_matmul(cols, w_mat, out_dtype=jnp.bfloat16)
    return y.reshape(N, Ho, Wo, CO)


def conv1x1(x, cp, *, extra_scale=1.0):
    N, H, W, CI = x.shape
    w_std = _standardize(cp["w"], cp["g"], extra_scale)      # (CO, CI, 1, 1)
    CO = w_std.shape[0]
    w_mat = w_std.reshape(CO, CI).T
    y = pallas_matmul(x.reshape(N * H * W, CI), w_mat, out_dtype=jnp.bfloat16)
    return y.reshape(N, H, W, CO)


# ----------------------------------------------------------------------------
# Pooling glue (mem-bound): shifted strided views, no window-axis blow-up.
# ----------------------------------------------------------------------------
def max_pool_3x3_s2_p1(x):
    N, H, W, C = x.shape
    xp = jnp.pad(x, ((0, 0), (1, 1), (1, 1), (0, 0)), constant_values=-1e30)
    Ho = (H + 2 - 3) // 2 + 1
    Wo = (W + 2 - 3) // 2 + 1
    out = None
    for i in range(3):
        for j in range(3):
            v = xp[:, i:i + 2 * Ho:2, j:j + 2 * Wo:2, :]
            out = v if out is None else jnp.maximum(out, v)
    return out


def avg_pool_2x2_s2(x):
    N, H, W, C = x.shape
    Ho, Wo = H // 2, W // 2
    v = x[:, :2 * Ho, :2 * Wo, :].astype(jnp.float32)
    v = v.reshape(N, Ho, 2, Wo, 2, C).mean(axis=(2, 4))
    return v.astype(jnp.bfloat16)


# ----------------------------------------------------------------------------
# Model (parameters + forward), mirroring ResNet.__init__ / _make_layer.
# ----------------------------------------------------------------------------
def _conv_params(key, out_c, in_c, k):
    w = jax.random.normal(key, (out_c, in_c, k, k), jnp.float32)
    w = w * (2.0 / (in_c * k * k)) ** 0.5
    g = jnp.ones((out_c,), jnp.float32)      # ScaledStdConv2d gain, init 1
    return {"w": w, "g": g}


def init_resnet18(key, alpha=0.25, num_classes=10, imagenet=True):
    layers_cfg = [2, 2, 2, 2]                # ResNet-18 (block expansion = 1)
    params = {}
    key, k = jax.random.split(key)
    params["conv1"] = _conv_params(k, 64, 3, 7 if imagenet else 3)
    inplanes = 64
    expected_var = 1.0
    all_layers = []
    for planes, blocks, stride in zip([64, 128, 256, 512], layers_cfg,
                                      [1, 2, 2, 2]):
        layer = []
        beta = 1.0 / expected_var ** 0.5
        has_down = (stride != 1) or (inplanes != planes)
        key, k1, k2 = jax.random.split(key, 3)
        blk = {"alpha": alpha, "beta": beta, "stride": stride,
               "conv1": _conv_params(k1, planes, inplanes, 3),
               "conv2": _conv_params(k2, planes, planes, 3),
               "downsample": None}
        if has_down:
            key, k3 = jax.random.split(key)
            blk["downsample"] = _conv_params(k3, planes, inplanes, 1)
            expected_var = 1.0
        layer.append(blk)
        inplanes = planes
        for _ in range(1, blocks):
            beta = 1.0 / expected_var ** 0.5
            key, k1, k2 = jax.random.split(key, 3)
            layer.append({"alpha": alpha, "beta": beta, "stride": 1,
                          "conv1": _conv_params(k1, planes, inplanes, 3),
                          "conv2": _conv_params(k2, planes, planes, 3),
                          "downsample": None})
            expected_var += alpha ** 2
        all_layers.append(layer)
    params["layers"] = all_layers
    key, kw = jax.random.split(key)
    params["fc"] = {"w": jax.random.normal(kw, (num_classes, 512),
                                           jnp.float32) * 0.01,
                    "b": jnp.zeros((num_classes,), jnp.float32)}
    return params


def basic_block(x, p):
    # TODO(synk): the `block` / `ScaledStdConv2d` class bodies were not provided;
    # an NF-style pre-activation BasicBlock is assumed (same as the previously
    # reviewed version): out = alpha*conv2(relu(conv1(relu(x)*beta))) + shortcut,
    # shortcut = AvgPool2x2+conv1x1 of the activated input when downsampling, else x.
    beta, alpha, stride = p["beta"], p["alpha"], p["stride"]
    if p["downsample"] is not None:
        act = jnp.maximum(x, 0.0)
        sc = conv1x1(avg_pool_2x2_s2(act), p["downsample"], extra_scale=beta)
    else:
        sc = x
    if stride == 1:
        h = conv3x3_s1(x, p["conv1"], relu_in=True, extra_scale=beta)
    else:
        h = conv_im2col(jnp.maximum(x, 0.0), p["conv1"], k=3, stride=stride,
                        pad=1, extra_scale=beta)
    # The middle ReLU, alpha scale and residual add are fused into conv2's kernel.
    return conv3x3_s1(h, p["conv2"], relu_in=True, extra_scale=alpha, residual=sc)


def resnet_forward(params, x_nchw, imagenet=True):
    x = jnp.transpose(x_nchw, (0, 2, 3, 1)).astype(jnp.bfloat16)   # NCHW->NHWC
    if imagenet:
        x = conv_im2col(x, params["conv1"], k=7, stride=2, pad=3)
        x = max_pool_3x3_s2_p1(x)
    else:
        x = conv_im2col(x, params["conv1"], k=3, stride=1, pad=1)
    for layer in params["layers"]:
        for blk in layer:
            x = basic_block(x, blk)
    pooled = global_avg_pool(x)                                    # (N, 512) f32
    w_fc = params["fc"]["w"].astype(jnp.bfloat16).T                # (512, classes)
    logits = pallas_matmul(pooled.astype(jnp.bfloat16), w_fc,
                           out_dtype=jnp.float32)
    return logits + params["fc"]["b"][None, :]


if __name__ == "__main__":
    key = jax.random.PRNGKey(0)
    pkey, xkey = jax.random.split(key)
    params = init_resnet18(pkey, alpha=0.25, num_classes=10, imagenet=True)
    x = jax.random.normal(xkey, (2, 3, 32, 32), jnp.float32)       # small NCHW input
    out = resnet_forward(params, x, imagenet=True)
    out = jax.block_until_ready(out)
    assert out.shape == (2, 10)
    assert bool(jnp.all(jnp.isfinite(out)))
    print("KERNEL_OK")
</pallas_src>

<mosaic_0001>
module attributes {stable_mosaic.version = 11 : i64} {
  func.func @_matmul_kernel(%arg0: i32, %arg1: i32, %arg2: memref<512x147xbf16, #tpu.memory_space<vmem>>, %arg3: memref<147x64xbf16, #tpu.memory_space<vmem>>, %arg4: memref<512x64xbf16, #tpu.memory_space<vmem>>) attributes {dimension_semantics = [#tpu.dimension_semantics<parallel>, #tpu.dimension_semantics<parallel>], iteration_bounds = array<i64: 1, 1>, scalar_prefetch = 0 : i64, scratch_operands = 0 : i64, tpu.core_type = #tpu.core_type<tc>, window_params = [{transform_indices = @transform_0, window_bounds = array<i64: 512, 147>}, {transform_indices = @transform_1, window_bounds = array<i64: 147, 64>}, {transform_indices = @transform_2, window_bounds = array<i64: 512, 64>}]} {
    %c0 = arith.constant 0 : index
    %c0_0 = arith.constant 0 : index
    %0 = vector.load %arg2[%c0, %c0_0] : memref<512x147xbf16, #tpu.memory_space<vmem>>, vector<512x147xbf16>
    %c0_1 = arith.constant 0 : index
    %c0_2 = arith.constant 0 : index
    %1 = vector.load %arg3[%c0_1, %c0_2] : memref<147x64xbf16, #tpu.memory_space<vmem>>, vector<147x64xbf16>
    %cst = arith.constant dense<0.000000e+00> : vector<512x64xf32>
    %2 = tpu.matmul %0, %1, %cst {dimension_numbers = #tpu.dot_dimension_numbers<[1], [0], [0], [1], [0, 0, 1, 1], [], []>} : vector<512x147xbf16>, vector<147x64xbf16>, vector<512x64xf32> -> vector<512x64xf32>
    %3 = arith.truncf %2 : vector<512x64xf32> to vector<512x64xbf16>
    %c0_3 = arith.constant 0 : index
    %c0_4 = arith.constant 0 : index
    %4 = vector.load %arg4[%c0_3, %c0_4] : memref<512x64xbf16, #tpu.memory_space<vmem>>, vector<512x64xbf16>
    tpu.vector_store %arg4[%c0_3, %c0_4], %3 {strides = array<i32>} : memref<512x64xbf16, #tpu.memory_space<vmem>>, vector<512x64xbf16>,
    return
  }
  func.func @transform_0(%arg0: i32, %arg1: i32) -> (i32, i32) {
    %c0_i32 = arith.constant 0 : i32
    %c0_i32_0 = arith.constant 0 : i32
    return %arg0, %c0_i32 : i32, i32
  }
  func.func @transform_1(%arg0: i32, %arg1: i32) -> (i32, i32) {
    %c0_i32 = arith.constant 0 : i32
    %c0_i32_0 = arith.constant 0 : i32
    return %c0_i32, %arg1 : i32, i32
  }
  func.func @transform_2(%arg0: i32, %arg1: i32) -> (i32, i32) {
    %c0_i32 = arith.constant 0 : i32
    return %arg0, %arg1 : i32, i32
  }
}

</mosaic_0001>

<bundles_post_ra>
// kernel: tpu_custom_call.1
= control target key start
LH: loop header
LB: loop body
LE: loop exit
PB: predicated region body
PF: predicated region fallthrough
CT: control target
= control target key end

     0   :  { %v1520_v0 = vmov 0   ;;  %vm440_vm0 = vcmask 154624   ;;  %vm537_vm1 = vcmask 1040384   ;;  %vm538_vm2 = vcmask 1041408   ;;  %s2047_s1 = inlined_call_operand.vmem [shape: bf16[147,64], index: 1, kind: input, shape index: {}]   ;;  %s2048_s0 = inlined_call_operand.vmem [shape: bf16[512,147], index: 0, kind: input, shape index: {}]   ;;  %s2049_s2 = inlined_call_operand.vmem [shape: bf16[512,64], index: 2, kind: output, shape index: {}]  }
   0x1   :  { %544 = vmatprep.subr.bf16.mxu0 %v1520_v0  ;;  %1392 = vmatprep.subr.bf16.mxu1 %v1520_v0  ;;  %v1414_v1 = vld [vmem:[%s2047_s1] sm:$0xff]   ;;  %v1415_v2 = vld [vmem:[%s2047_s1 + $0x8] sm:$0xff]   ;;  %v1416_v3 = vld [vmem:[%s2047_s1 + $0x10] sm:$0xff]   ;;  %v1521_v11 = vmov 65535   ;;  %vm1089_vm3 = vcmask 519168  }
   0x2   :  { %545 = vmatpush1.bf16.msra.mxu0 %v1414_v1  ;;  %1402 = vmatpush1.bf16.msra.mxu1 %v1414_v1  ;;  %v1417_v4 = vld [vmem:[%s2047_s1 + $0x18] sm:$0xff]   ;;  %v1426_v5 = vld [vmem:[%s2048_s0 + $0x4] ss:$8 sps:$4 sm:$0xff]   ;;  %v1420_v9 = vld [vmem:[%s2047_s1 + $0x30] sm:$0xff]   ;;  %v539_v12 = vsel %vm537_vm1, 4294967295, %v1521_v11 }
   0x3   :  { %546 = vmatprep.subr.bf16.mxu0 %v1520_v0  ;;  %1393 = vmatprep.subr.bf16.mxu1 %v1520_v0  ;;  %v1429_v6 = vld [vmem:[%s2048_s0 + $0x104] ss:$8 sps:$4 sm:$0xff]   ;;  %v1421_v10 = vld [vmem:[%s2047_s1 + $0x38] sm:$0xff]   ;;  %v1423_v14 = vld [vmem:[%s2047_s1 + $0x48] ss:$0 sps:$4 sm:$0x33]  }
   0x4   :  { %1232 = vmatprep.mubr.msk.bf16.mxu0 %vm440_vm0, %v1426_v5  ;;  %v1418_v7 = vld [vmem:[%s2047_s1 + $0x20] sm:$0xff]   ;;  %1248 = vmatprep.mubr.msk.bf16.mxu1 %vm440_vm0, %v1429_v6  ;;  %v1419_v8 = vld [vmem:[%s2047_s1 + $0x28] sm:$0xff]   ;;  %v540_v15 = vsel %vm538_vm2, %v539_v12, 0  ;;  %v1430_v19 = vld [vmem:[%s2048_s0 + $0x14] ss:$8 sps:$4 sm:$0xff]  }
   0x5   :  { %v1422_v13 = vld [vmem:[%s2047_s1 + $0x40] sm:$0xff]   ;;  %v542_v16 = vand.u32 %v1423_v14, %v540_v15  ;;  %v1432_v20 = vld [vmem:[%s2048_s0 + $0x114] ss:$8 sps:$4 sm:$0xff]   ;;  %v1434_v21 = vld [vmem:[%s2048_s0 + $0x10] ss:$8 sps:$4 sm:$0xff]  }
   0x6   :  { %547 = vmatpush1.bf16.msra.mxu0 %v1415_v2  ;;  %1403 = vmatpush1.bf16.msra.mxu1 %v1415_v2  ;;  %v1424_v17 = vld [vmem:[%s2048_s0] ss:$8 sps:$4 sm:$0xff]   ;;  %v1435_v22 = vld [vmem:[%s2048_s0 + $0x110] ss:$8 sps:$4 sm:$0xff]   ;;  %v1436_v23 = vld [vmem:[%s2048_s0 + $0x24] ss:$8 sps:$4 sm:$0xff]  }
   0x7   :  { %548 = vmatprep.subr.bf16.mxu0 %v1520_v0  ;;  %1394 = vmatprep.subr.bf16.mxu1 %v1520_v0  ;;  %v1427_v18 = vld [vmem:[%s2048_s0 + $0x100] ss:$8 sps:$4 sm:$0xff]   ;;  %v1438_v24 = vld [vmem:[%s2048_s0 + $0x124] ss:$8 sps:$4 sm:$0xff]   ;;  %v1442_v27 = vld [vmem:[%s2048_s0 + $0x34] ss:$8 sps:$4 sm:$0xff]  }
   0x8   :  { %v1440_v25 = vld [vmem:[%s2048_s0 + $0x20] ss:$8 sps:$4 sm:$0xff]   ;;  %v1444_v28 = vld [vmem:[%s2048_s0 + $0x134] ss:$8 sps:$4 sm:$0xff]   ;;  %v1446_v29 = vld [vmem:[%s2048_s0 + $0x30] ss:$8 sps:$4 sm:$0xff]  }
   0x9   :  { %v1441_v26 = vld [vmem:[%s2048_s0 + $0x120] ss:$8 sps:$4 sm:$0xff]   ;;  %v1447_v30 = vld [vmem:[%s2048_s0 + $0x130] ss:$8 sps:$4 sm:$0xff]   ;;  %v1448_v31 = vld [vmem:[%s2048_s0 + $0x44] ss:$8 sps:$4 sm:$0xff]  }
   0xa   :  { %549 = vmatpush1.bf16.msra.mxu0 %v1416_v3  ;;  %1404 = vmatpush1.bf16.msra.mxu1 %v1416_v3  ;;  %v1450_v32 = vld [vmem:[%s2048_s0 + $0x144] ss:$8 sps:$4 sm:$0xff]   ;;  %v1452_v33 = vld [vmem:[%s2048_s0 + $0x40] ss:$8 sps:$4 sm:$0xff]   ;;  %v1454_v35 = vld [vmem:[%s2048_s0 + $0x54] ss:$8 sps:$4 sm:$0xff]  }
   0xb   :  { %550 = vmatprep.subr.bf16.mxu0 %v1520_v0  ;;  %1395 = vmatprep.subr.bf16.mxu1 %v1520_v0  ;;  %v1453_v34 = vld [vmem:[%s2048_s0 + $0x140] ss:$8 sps:$4 sm:$0xff]   ;;  %v1456_v36 = vld [vmem:[%s2048_s0 + $0x154] ss:$8 sps:$4 sm:$0xff]   ;;  %v1458_v37 = vld [vmem:[%s2048_s0 + $0x50] ss:$8 sps:$4 sm:$0xff]  }
   0xc   :  { %v1459_v38 = vld [vmem:[%s2048_s0 + $0x150] ss:$8 sps:$4 sm:$0xff]   ;;  %v1460_v39 = vld [vmem:[%s2048_s0 + $0x64] ss:$8 sps:$4 sm:$0xff]   ;;  %v1464_v41 = vld [vmem:[%s2048_s0 + $0x60] ss:$8 sps:$4 sm:$0xff]  }
   0xd   :  { %v1462_v40 = vld [vmem:[%s2048_s0 + $0x164] ss:$8 sps:$4 sm:$0xff]   ;;  %v1465_v42 = vld [vmem:[%s2048_s0 + $0x160] ss:$8 sps:$4 sm:$0xff]   ;;  %v1466_v43 = vld [vmem:[%s2048_s0 + $0x74] ss:$8 sps:$4 sm:$0xff]  }
   0xe   :  { %551 = vmatpush1.bf16.msra.mxu0 %v1417_v4  ;;  %1405 = vmatpush1.bf16.msra.mxu1 %v1417_v4  ;;  %v1468_v44 = vld [vmem:[%s2048_s0 + $0x174] ss:$8 sps:$4 sm:$0xff]   ;;  %v1470_v45 = vld [vmem:[%s2048_s0 + $0x70] ss:$8 sps:$4 sm:$0xff]   ;;  %v1472_v47 = vld [vmem:[%s2048_s0 + $0x84] ss:$8 sps:$4 sm:$0xff]  }
   0xf   :  { %552 = vmatprep.subr.bf16.mxu0 %v1520_v0  ;;  %1396 = vmatprep.subr.bf16.mxu1 %v1520_v0  ;;  %v1471_v46 = vld [vmem:[%s2048_s0 + $0x170] ss:$8 sps:$4 sm:$0xff]   ;;  %v1474_v48 = vld [vmem:[%s2048_s0 + $0x184] ss:$8 sps:$4 sm:$0xff]   ;;  %v1476_v49 = vld [vmem:[%s2048_s0 + $0x80] ss:$8 sps:$4 sm:$0xff]  }
  0x10   :  { %v1477_v50 = vld [vmem:[%s2048_s0 + $0x180] ss:$8 sps:$4 sm:$0xff]   ;;  %v1478_v51 = vld [vmem:[%s2048_s0 + $0x94] ss:$8 sps:$4 sm:$0xff]   ;;  %v1482_v53 = vld [vmem:[%s2048_s0 + $0x90] ss:$8 sps:$4 sm:$0xff]  }
  0x11   :  { %v1480_v52 = vld [vmem:[%s2048_s0 + $0x194] ss:$8 sps:$4 sm:$0xff]   ;;  %v1483_v54 = vld [vmem:[%s2048_s0 + $0x190] ss:$8 sps:$4 sm:$0xff]   ;;  %v1484_v55 = vld [vmem:[%s2048_s0 + $0xa4] ss:$8 sps:$4 sm:$0xff]  }
  0x12   :  { %553 = vmatpush1.bf16.msra.mxu0 %v1418_v7  ;;  %1406 = vmatpush1.bf16.msra.mxu1 %v1418_v7  ;;  %v1486_v56 = vld [vmem:[%s2048_s0 + $0x1a4] ss:$8 sps:$4 sm:$0xff]   ;;  %v1488_v57 = vld [vmem:[%s2048_s0 + $0xa0] ss:$8 sps:$4 sm:$0xff]   ;;  %v1490_v59 = vld [vmem:[%s2048_s0 + $0xb4] ss:$8 sps:$4 sm:$0xff]  }
  0x13   :  { %554 = vmatprep.subr.bf16.mxu0 %v1520_v0  ;;  %1397 = vmatprep.subr.bf16.mxu1 %v1520_v0  ;;  %v1489_v58 = vld [vmem:[%s2048_s0 + $0x1a0] ss:$8 sps:$4 sm:$0xff]   ;;  %v1492_v60 = vld [vmem:[%s2048_s0 + $0x1b4] ss:$8 sps:$4 sm:$0xff]   ;;  %v1494_v61 = vld [vmem:[%s2048_s0 + $0xb0] ss:$8 sps:$4 sm:$0xff]  }
  0x14   :  { %v1495_v62 = vld [vmem:[%s2048_s0 + $0x1b0] ss:$8 sps:$4 sm:$0xff]   ;;  %v1496_v63 = vld [vmem:[%s2048_s0 + $0xc4] ss:$8 sps:$4 sm:$0xff]   ;;  %v1500_v1 = vld [vmem:[%s2048_s0 + $0xc0] ss:$8 sps:$4 sm:$0xff]  }
  0x15   :  { %v1501_v2 = vld [vmem:[%s2048_s0 + $0x1c0] ss:$8 sps:$4 sm:$0xff]   ;;  %v1502_v3 = vld [vmem:[%s2048_s0 + $0xd4] ss:$8 sps:$4 sm:$0xff]   ;;  %v1506_v5 = vld [vmem:[%s2048_s0 + $0xd0] ss:$8 sps:$4 sm:$0xff]  }
  0x16   :  { %555 = vmatpush1.bf16.msra.mxu0 %v1419_v8  ;;  %1407 = vmatpush1.bf16.msra.mxu1 %v1419_v8  ;;  %v1504_v4 = vld [vmem:[%s2048_s0 + $0x1d4] ss:$8 sps:$4 sm:$0xff]   ;;  %v1507_v6 = vld [vmem:[%s2048_s0 + $0x1d0] ss:$8 sps:$4 sm:$0xff]   ;;  %v1508_v7 = vld [vmem:[%s2048_s0 + $0xe4] ss:$8 sps:$4 sm:$0xff]  }
  0x17   :  { %556 = vmatprep.subr.bf16.mxu0 %v1520_v0  ;;  %1398 = vmatprep.subr.bf16.mxu1 %v1520_v0  ;;  %v1510_v8 = vld [vmem:[%s2048_s0 + $0x1e4] ss:$8 sps:$4 sm:$0xff]   ;;  %v1514_v11 = vld [vmem:[%s2048_s0 + $0xf4] ss:$8 sps:$4 sm:$0xff]   ;;  %v1519_v14 = vld [vmem:[%s2048_s0 + $0x1f0] ss:$8 sps:$4 sm:$0xff]  }
  0x18   :  { %v1516_v12 = vld [vmem:[%s2048_s0 + $0x1f4] ss:$8 sps:$4 sm:$0xff]  }
  0x1a   :  { %557 = vmatpush1.bf16.msra.mxu0 %v1420_v9  ;;  %1408 = vmatpush1.bf16.msra.mxu1 %v1420_v9  ;;  %v1512_v9 = vld [vmem:[%s2048_s0 + $0xe0] ss:$8 sps:$4 sm:$0xff]  }
  0x1b   :  { %558 = vmatprep.subr.bf16.mxu0 %v1520_v0  ;;  %1399 = vmatprep.subr.bf16.mxu1 %v1520_v0 }
  0x1e   :  { %559 = vmatpush1.bf16.msra.mxu0 %v1421_v10  ;;  %1409 = vmatpush1.bf16.msra.mxu1 %v1421_v10  ;;  %v1513_v10 = vld [vmem:[%s2048_s0 + $0x1e0] ss:$8 sps:$4 sm:$0xff]  }
  0x1f   :  { %560 = vmatprep.subr.bf16.mxu0 %v1520_v0  ;;  %1400 = vmatprep.subr.bf16.mxu1 %v1520_v0 }
  0x22   :  { %561 = vmatpush1.bf16.msra.mxu0 %v1422_v13  ;;  %1410 = vmatpush1.bf16.msra.mxu1 %v1422_v13  ;;  %v1518_v13 = vld [vmem:[%s2048_s0 + $0xf0] ss:$8 sps:$4 sm:$0xff]  }
  0x23   :  { %562 = vmatprep.subr.bf16.mxu0 %v1520_v0  ;;  %1401 = vmatprep.subr.bf16.mxu1 %v1520_v0  ;;  %v1498_v0 = vld [vmem:[%s2048_s0 + $0x1c4] ss:$8 sps:$4 sm:$0xff]  }
  0x26   :  { %563 = vmatpush1.bf16.msra.mxu0 %v542_v16  ;;  %1411 = vmatpush1.bf16.msra.mxu1 %v542_v16 }
  0x29   :  { %577 = vmatmul.mubr.bf16.vlgmr.msra.gmra.mrb[0].mxu0 %v1424_v17  ;;  %705 = vmatmul.mubr.bf16.vlgmr.msra.gmra.mrb[0].mxu1 %v1427_v18 }
  0x2a   :  { %1233 = vmatprep.mubr.msk.bf16.mxu0 %vm440_vm0, %v1430_v19  ;;  %1249 = vmatprep.mubr.msk.bf16.mxu1 %vm440_vm0, %v1432_v20 }
  0x31   :  { %585 = vmatmul.mubr.bf16.gmra.mrb[4].mxu0 %v1434_v21  ;;  %713 = vmatmul.mubr.bf16.gmra.mrb[4].mxu1 %v1435_v22 }
  0x32   :  { %1234 = vmatprep.mubr.msk.bf16.mxu0 %vm440_vm0, %v1436_v23  ;;  %1250 = vmatprep.mubr.msk.bf16.mxu1 %vm440_vm0, %v1438_v24 }
  0x39   :  { %593 = vmatmul.mubr.bf16.gmra.mrb[8].mxu0 %v1440_v25  ;;  %721 = vmatmul.mubr.bf16.gmra.mrb[8].mxu1 %v1441_v26 }
  0x3a   :  { %1235 = vmatprep.mubr.msk.bf16.mxu0 %vm440_vm0, %v1442_v27  ;;  %1251 = vmatprep.mubr.msk.bf16.mxu1 %vm440_vm0, %v1444_v28 }
  0x41   :  { %601 = vmatmul.mubr.bf16.gmra.mrb[12].mxu0 %v1446_v29  ;;  %729 = vmatmul.mubr.bf16.gmra.mrb[12].mxu1 %v1447_v30 }
  0x42   :  { %1236 = vmatprep.mubr.msk.bf16.mxu0 %vm440_vm0, %v1448_v31  ;;  %1252 = vmatprep.mubr.msk.bf16.mxu1 %vm440_vm0, %v1450_v32 }
  0x49   :  { %609 = vmatmul.mubr.bf16.gmra.mrb[16].mxu0 %v1452_v33  ;;  %737 = vmatmul.mubr.bf16.gmra.mrb[16].mxu1 %v1453_v34 }
  0x4a   :  { %1237 = vmatprep.mubr.msk.bf16.mxu0 %vm440_vm0, %v1454_v35  ;;  %1253 = vmatprep.mubr.msk.bf16.mxu1 %vm440_vm0, %v1456_v36 }
  0x51   :  { %617 = vmatmul.mubr.bf16.gmra.mrb[20].mxu0 %v1458_v37  ;;  %745 = vmatmul.mubr.bf16.gmra.mrb[20].mxu1 %v1459_v38 }
  0x52   :  { %1238 = vmatprep.mubr.msk.bf16.mxu0 %vm440_vm0, %v1460_v39  ;;  %1254 = vmatprep.mubr.msk.bf16.mxu1 %vm440_vm0, %v1462_v40 }
  0x59   :  { %625 = vmatmul.mubr.bf16.gmra.mrb[24].mxu0 %v1464_v41  ;;  %753 = vmatmul.mubr.bf16.gmra.mrb[24].mxu1 %v1465_v42 }
  0x5a   :  { %1239 = vmatprep.mubr.msk.bf16.mxu0 %vm440_vm0, %v1466_v43  ;;  %1255 = vmatprep.mubr.msk.bf16.mxu1 %vm440_vm0, %v1468_v44 }
  0x61   :  { %633 = vmatmul.mubr.bf16.gmra.mrb[28].mxu0 %v1470_v45  ;;  %761 = vmatmul.mubr.bf16.gmra.mrb[28].mxu1 %v1471_v46 }
  0x62   :  { %1240 = vmatprep.mubr.msk.bf16.mxu0 %vm440_vm0, %v1472_v47  ;;  %1256 = vmatprep.mubr.msk.bf16.mxu1 %vm440_vm0, %v1474_v48 }
  0x69   :  { %641 = vmatmul.mubr.bf16.gmra.mrb[32].mxu0 %v1476_v49  ;;  %769 = vmatmul.mubr.bf16.gmra.mrb[32].mxu1 %v1477_v50 }
  0x6a   :  { %1241 = vmatprep.mubr.msk.bf16.mxu0 %vm440_vm0, %v1478_v51  ;;  %1257 = vmatprep.mubr.msk.bf16.mxu1 %vm440_vm0, %v1480_v52 }
  0x71   :  { %649 = vmatmul.mubr.bf16.gmra.mrb[36].mxu0 %v1482_v53  ;;  %777 = vmatmul.mubr.bf16.gmra.mrb[36].mxu1 %v1483_v54 }
  0x72   :  { %1242 = vmatprep.mubr.msk.bf16.mxu0 %vm440_vm0, %v1484_v55  ;;  %1258 = vmatprep.mubr.msk.bf16.mxu1 %vm440_vm0, %v1486_v56 }
  0x79   :  { %657 = vmatmul.mubr.bf16.gmra.mrb[40].mxu0 %v1488_v57  ;;  %785 = vmatmul.mubr.bf16.gmra.mrb[40].mxu1 %v1489_v58 }
  0x7a   :  { %1243 = vmatprep.mubr.msk.bf16.mxu0 %vm440_vm0, %v1490_v59  ;;  %1259 = vmatprep.mubr.msk.bf16.mxu1 %vm440_vm0, %v1492_v60 }
  0x81   :  { %665 = vmatmul.mubr.bf16.gmra.mrb[44].mxu0 %v1494_v61  ;;  %793 = vmatmul.mubr.bf16.gmra.mrb[44].mxu1 %v1495_v62 }
  0x82   :  { %1244 = vmatprep.mubr.msk.bf16.mxu0 %vm440_vm0, %v1496_v63  ;;  %1260 = vmatprep.mubr.msk.bf16.mxu1 %vm440_vm0, %v1498_v0 }
  0x89   :  { %673 = vmatmul.mubr.bf16.gmra.mrb[48].mxu0 %v1500_v1  ;;  %801 = vmatmul.mubr.bf16.gmra.mrb[48].mxu1 %v1501_v2 }
  0x8a   :  { %1245 = vmatprep.mubr.msk.bf16.mxu0 %vm440_vm0, %v1502_v3  ;;  %1261 = vmatprep.mubr.msk.bf16.mxu1 %vm440_vm0, %v1504_v4 }
  0x91   :  { %681 = vmatmul.mubr.bf16.gmra.mrb[52].mxu0 %v1506_v5  ;;  %809 = vmatmul.mubr.bf16.gmra.mrb[52].mxu1 %v1507_v6 }
  0x92   :  { %1246 = vmatprep.mubr.msk.bf16.mxu0 %vm440_vm0, %v1508_v7  ;;  %1262 = vmatprep.mubr.msk.bf16.mxu1 %vm440_vm0, %v1510_v8 }
  0x99   :  { %689 = vmatmul.mubr.bf16.gmra.mrb[56].mxu0 %v1512_v9  ;;  %817 = vmatmul.mubr.bf16.gmra.mrb[56].mxu1 %v1513_v10 }
  0x9a   :  { %1247 = vmatprep.mubr.msk.bf16.mxu0 %vm440_vm0, %v1514_v11  ;;  %1263 = vmatprep.mubr.msk.bf16.mxu1 %vm440_vm0, %v1516_v12 }
  0xa1   :  { %697 = vmatmul.mubr.bf16.gmra.mrb[60].mxu0 %v1518_v13  ;;  %825 = vmatmul.mubr.bf16.gmra.mrb[60].mxu1 %v1519_v14 }
  0xfc   :  { %v578_v15 = vpop.f32.mrb[0].mxu0  ;;  %v706_v16 = vpop.f32.mrb[0].mxu1 }
  0xfd   :  { %v1328_v17 = vpack.c.bf16 %v578_v15, %v578_v15  ;;  %v1360_v18 = vpack.c.bf16 %v706_v16, %v706_v16  ;;  %v580_v19 = vpop.f32.mrb[1].mxu0  ;;  %v708_v20 = vpop.f32.mrb[1].mxu1 }
  0xfe   :  { %v581_v21 = vpop.f32.mrb[2].mxu0  ;;  %v709_v22 = vpop.f32.mrb[2].mxu1 }
  0xff   :  { %1090 = vst.msk [vmem:[%s2049_s2] sm:$0xf] %vm1089_vm3, %v1328_v17  ;;  %1122 = vst.msk [vmem:[%s2049_s2 + $0x80] sm:$0xf] %vm1089_vm3, %v1360_v18  ;;  %v1329_v23 = vpack.c.bf16 %v581_v21, %v581_v21  ;;  %v1361_v24 = vpack.c.bf16 %v709_v22, %v709_v22  ;;  %v583_v25 = vpop.f32.mrb[3].mxu0  ;;  %v711_v26 = vpop.f32.mrb[3].mxu1 }
 0x101   :  { %1091 = vst.msk [vmem:[%s2049_s2 + $0x4] sm:$0xf] %vm1089_vm3, %v1329_v23  ;;  %1123 = vst.msk [vmem:[%s2049_s2 + $0x84] sm:$0xf] %vm1089_vm3, %v1361_v24 }
 0x104   :  { %v586_v27 = vpop.f32.mrb[4].mxu0  ;;  %v714_v28 = vpop.f32.mrb[4].mxu1 }
 0x105   :  { %v1330_v29 = vpack.c.bf16 %v586_v27, %v586_v27  ;;  %v1362_v30 = vpack.c.bf16 %v714_v28, %v714_v28  ;;  %v588_v31 = vpop.f32.mrb[5].mxu0  ;;  %v716_v32 = vpop.f32.mrb[5].mxu1 }
 0x106   :  { %v589_v33 = vpop.f32.mrb[6].mxu0  ;;  %v717_v34 = vpop.f32.mrb[6].mxu1 }
 0x107   :  { %1092 = vst.msk [vmem:[%s2049_s2 + $0x8] sm:$0xf] %vm1089_vm3, %v1330_v29  ;;  %1124 = vst.msk [vmem:[%s2049_s2 + $0x88] sm:$0xf] %vm1089_vm3, %v1362_v30  ;;  %v1331_v35 = vpack.c.bf16 %v589_v33, %v589_v33  ;;  %v1363_v36 = vpack.c.bf16 %v717_v34, %v717_v34  ;;  %v591_v37 = vpop.f32.mrb[7].mxu0  ;;  %v719_v38 = vpop.f32.mrb[7].mxu1 }
 0x109   :  { %1093 = vst.msk [vmem:[%s2049_s2 + $0xc] sm:$0xf] %vm1089_vm3, %v1331_v35  ;;  %1125 = vst.msk [vmem:[%s2049_s2 + $0x8c] sm:$0xf] %vm1089_vm3, %v1363_v36 }
 0x10c   :  { %v594_v39 = vpop.f32.mrb[8].mxu0  ;;  %v722_v40 = vpop.f32.mrb[8].mxu1 }
 0x10d   :  { %v1332_v41 = vpack.c.bf16 %v594_v39, %v594_v39  ;;  %v1364_v42 = vpack.c.bf16 %v722_v40, %v722_v40  ;;  %v596_v43 = vpop.f32.mrb[9].mxu0  ;;  %v724_v44 = vpop.f32.mrb[9].mxu1 }
 0x10e   :  { %v597_v45 = vpop.f32.mrb[10].mxu0  ;;  %v725_v46 = vpop.f32.mrb[10].mxu1 }
 0x10f   :  { %1094 = vst.msk [vmem:[%s2049_s2 + $0x10] sm:$0xf] %vm1089_vm3, %v1332_v41  ;;  %1126 = vst.msk [vmem:[%s2049_s2 + $0x90] sm:$0xf] %vm1089_vm3, %v1364_v42  ;;  %v1333_v47 = vpack.c.bf16 %v597_v45, %v597_v45  ;;  %v1365_v48 = vpack.c.bf16 %v725_v46, %v725_v46  ;;  %v599_v49 = vpop.f32.mrb[11].mxu0  ;;  %v727_v50 = vpop.f32.mrb[11].mxu1 }
 0x111   :  { %1095 = vst.msk [vmem:[%s2049_s2 + $0x14] sm:$0xf] %vm1089_vm3, %v1333_v47  ;;  %1127 = vst.msk [vmem:[%s2049_s2 + $0x94] sm:$0xf] %vm1089_vm3, %v1365_v48 }
 0x114   :  { %v602_v51 = vpop.f32.mrb[12].mxu0  ;;  %v730_v52 = vpop.f32.mrb[12].mxu1 }
 0x115   :  { %v1334_v53 = vpack.c.bf16 %v602_v51, %v602_v51  ;;  %v1366_v54 = vpack.c.bf16 %v730_v52, %v730_v52  ;;  %v604_v55 = vpop.f32.mrb[13].mxu0  ;;  %v732_v56 = vpop.f32.mrb[13].mxu1 }
 0x116   :  { %v605_v57 = vpop.f32.mrb[14].mxu0  ;;  %v733_v58 = vpop.f32.mrb[14].mxu1 }
 0x117   :  { %1096 = vst.msk [vmem:[%s2049_s2 + $0x18] sm:$0xf] %vm1089_vm3, %v1334_v53  ;;  %1128 = vst.msk [vmem:[%s2049_s2 + $0x98] sm:$0xf] %vm1089_vm3, %v1366_v54  ;;  %v1335_v59 = vpack.c.bf16 %v605_v57, %v605_v57  ;;  %v1367_v60 = vpack.c.bf16 %v733_v58, %v733_v58  ;;  %v607_v61 = vpop.f32.mrb[15].mxu0  ;;  %v735_v62 = vpop.f32.mrb[15].mxu1 }
 0x119   :  { %1097 = vst.msk [vmem:[%s2049_s2 + $0x1c] sm:$0xf] %vm1089_vm3, %v1335_v59  ;;  %1129 = vst.msk [vmem:[%s2049_s2 + $0x9c] sm:$0xf] %vm1089_vm3, %v1367_v60 }
 0x11c   :  { %v610_v63 = vpop.f32.mrb[16].mxu0  ;;  %v738_v0 = vpop.f32.mrb[16].mxu1 }
 0x11d   :  { %v1336_v1 = vpack.c.bf16 %v610_v63, %v610_v63  ;;  %v1368_v2 = vpack.c.bf16 %v738_v0, %v738_v0  ;;  %v612_v3 = vpop.f32.mrb[17].mxu0  ;;  %v740_v4 = vpop.f32.mrb[17].mxu1 }
 0x11e   :  { %v613_v5 = vpop.f32.mrb[18].mxu0  ;;  %v741_v6 = vpop.f32.mrb[18].mxu1 }
 0x11f   :  { %1098 = vst.msk [vmem:[%s2049_s2 + $0x20] sm:$0xf] %vm1089_vm3, %v1336_v1  ;;  %1130 = vst.msk [vmem:[%s2049_s2 + $0xa0] sm:$0xf] %vm1089_vm3, %v1368_v2  ;;  %v1337_v7 = vpack.c.bf16 %v613_v5, %v613_v5  ;;  %v1369_v8 = vpack.c.bf16 %v741_v6, %v741_v6  ;;  %v615_v9 = vpop.f32.mrb[19].mxu0  ;;  %v743_v10 = vpop.f32.mrb[19].mxu1 }
 0x121   :  { %1099 = vst.msk [vmem:[%s2049_s2 + $0x24] sm:$0xf] %vm1089_vm3, %v1337_v7  ;;  %1131 = vst.msk [vmem:[%s2049_s2 + $0xa4] sm:$0xf] %vm1089_vm3, %v1369_v8 }
 0x124   :  { %v618_v11 = vpop.f32.mrb[20].mxu0  ;;  %v746_v12 = vpop.f32.mrb[20].mxu1 }
 0x125   :  { %v1338_v13 = vpack.c.bf16 %v618_v11, %v618_v11  ;;  %v1370_v14 = vpack.c.bf16 %v746_v12, %v746_v12  ;;  %v620_v15 = vpop.f32.mrb[21].mxu0  ;;  %v748_v16 = vpop.f32.mrb[21].mxu1 }
 0x126   :  { %v621_v17 = vpop.f32.mrb[22].mxu0  ;;  %v749_v18 = vpop.f32.mrb[22].mxu1 }
 0x127   :  { %1100 = vst.msk [vmem:[%s2049_s2 + $0x28] sm:$0xf] %vm1089_vm3, %v1338_v13  ;;  %1132 = vst.msk [vmem:[%s2049_s2 + $0xa8] sm:$0xf] %vm1089_vm3, %v1370_v14  ;;  %v1339_v19 = vpack.c.bf16 %v621_v17, %v621_v17  ;;  %v1371_v20 = vpack.c.bf16 %v749_v18, %v749_v18  ;;  %v623_v21 = vpop.f32.mrb[23].mxu0  ;;  %v751_v22 = vpop.f32.mrb[23].mxu1 }
 0x129   :  { %1101 = vst.msk [vmem:[%s2049_s2 + $0x2c] sm:$0xf] %vm1089_vm3, %v1339_v19  ;;  %1133 = vst.msk [vmem:[%s2049_s2 + $0xac] sm:$0xf] %vm1089_vm3, %v1371_v20 }
 0x12c   :  { %v626_v23 = vpop.f32.mrb[24].mxu0  ;;  %v754_v24 = vpop.f32.mrb[24].mxu1 }
 0x12d   :  { %v1340_v25 = vpack.c.bf16 %v626_v23, %v626_v23  ;;  %v1372_v26 = vpack.c.bf16 %v754_v24, %v754_v24  ;;  %v628_v27 = vpop.f32.mrb[25].mxu0  ;;  %v756_v28 = vpop.f32.mrb[25].mxu1 }
 0x12e   :  { %v629_v29 = vpop.f32.mrb[26].mxu0  ;;  %v757_v30 = vpop.f32.mrb[26].mxu1 }
 0x12f   :  { %1102 = vst.msk [vmem:[%s2049_s2 + $0x30] sm:$0xf] %vm1089_vm3, %v1340_v25  ;;  %1134 = vst.msk [vmem:[%s2049_s2 + $0xb0] sm:$0xf] %vm1089_vm3, %v1372_v26  ;;  %v1341_v31 = vpack.c.bf16 %v629_v29, %v629_v29  ;;  %v1373_v32 = vpack.c.bf16 %v757_v30, %v757_v30  ;;  %v631_v33 = vpop.f32.mrb[27].mxu0  ;;  %v759_v34 = vpop.f32.mrb[27].mxu1 }
 0x131   :  { %1103 = vst.msk [vmem:[%s2049_s2 + $0x34] sm:$0xf] %vm1089_vm3, %v1341_v31  ;;  %1135 = vst.msk [vmem:[%s2049_s2 + $0xb4] sm:$0xf] %vm1089_vm3, %v1373_v32 }
 0x134   :  { %v634_v35 = vpop.f32.mrb[28].mxu0  ;;  %v762_v36 = vpop.f32.mrb[28].mxu1 }
 0x135   :  { %v1342_v37 = vpack.c.bf16 %v634_v35, %v634_v35  ;;  %v1374_v38 = vpack.c.bf16 %v762_v36, %v762_v36  ;;  %v636_v39 = vpop.f32.mrb[29].mxu0  ;;  %v764_v40 = vpop.f32.mrb[29].mxu1 }
 0x136   :  { %v637_v41 = vpop.f32.mrb[30].mxu0  ;;  %v765_v42 = vpop.f32.mrb[30].mxu1 }
 0x137   :  { %1104 = vst.msk [vmem:[%s2049_s2 + $0x38] sm:$0xf] %vm1089_vm3, %v1342_v37  ;;  %1136 = vst.msk [vmem:[%s2049_s2 + $0xb8] sm:$0xf] %vm1089_vm3, %v1374_v38  ;;  %v1343_v43 = vpack.c.bf16 %v637_v41, %v637_v41  ;;  %v1375_v44 = vpack.c.bf16 %v765_v42, %v765_v42  ;;  %v639_v45 = vpop.f32.mrb[31].mxu0  ;;  %v767_v46 = vpop.f32.mrb[31].mxu1 }
 0x139   :  { %1105 = vst.msk [vmem:[%s2049_s2 + $0x3c] sm:$0xf] %vm1089_vm3, %v1343_v43  ;;  %1137 = vst.msk [vmem:[%s2049_s2 + $0xbc] sm:$0xf] %vm1089_vm3, %v1375_v44 }
 0x13c   :  { %v642_v47 = vpop.f32.mrb[32].mxu0  ;;  %v770_v48 = vpop.f32.mrb[32].mxu1 }
 0x13d   :  { %v1344_v49 = vpack.c.bf16 %v642_v47, %v642_v47  ;;  %v1376_v50 = vpack.c.bf16 %v770_v48, %v770_v48  ;;  %v644_v51 = vpop.f32.mrb[33].mxu0  ;;  %v772_v52 = vpop.f32.mrb[33].mxu1 }
 0x13e   :  { %v645_v53 = vpop.f32.mrb[34].mxu0  ;;  %v773_v54 = vpop.f32.mrb[34].mxu1 }
 0x13f   :  { %1106 = vst.msk [vmem:[%s2049_s2 + $0x40] sm:$0xf] %vm1089_vm3, %v1344_v49  ;;  %1138 = vst.msk [vmem:[%s2049_s2 + $0xc0] sm:$0xf] %vm1089_vm3, %v1376_v50  ;;  %v1345_v55 = vpack.c.bf16 %v645_v53, %v645_v53  ;;  %v1377_v56 = vpack.c.bf16 %v773_v54, %v773_v54  ;;  %v647_v57 = vpop.f32.mrb[35].mxu0  ;;  %v775_v58 = vpop.f32.mrb[35].mxu1 }
 0x141   :  { %1107 = vst.msk [vmem:[%s2049_s2 + $0x44] sm:$0xf] %vm1089_vm3, %v1345_v55  ;;  %1139 = vst.msk [vmem:[%s2049_s2 + $0xc4] sm:$0xf] %vm1089_vm3, %v1377_v56 }
 0x144   :  { %v650_v59 = vpop.f32.mrb[36].mxu0  ;;  %v778_v60 = vpop.f32.mrb[36].mxu1 }
 0x145   :  { %v1346_v61 = vpack.c.bf16 %v650_v59, %v650_v59  ;;  %v1378_v62 = vpack.c.bf16 %v778_v60, %v778_v60  ;;  %v652_v63 = vpop.f32.mrb[37].mxu0  ;;  %v780_v0 = vpop.f32.mrb[37].mxu1 }
 0x146   :  { %v653_v1 = vpop.f32.mrb[38].mxu0  ;;  %v781_v2 = vpop.f32.mrb[38].mxu1 }
 0x147   :  { %1108 = vst.msk [vmem:[%s2049_s2 + $0x48] sm:$0xf] %vm1089_vm3, %v1346_v61  ;;  %1140 = vst.msk [vmem:[%s2049_s2 + $0xc8] sm:$0xf] %vm1089_vm3, %v1378_v62  ;;  %v1347_v3 = vpack.c.bf16 %v653_v1, %v653_v1  ;;  %v1379_v4 = vpack.c.bf16 %v781_v2, %v781_v2  ;;  %v655_v5 = vpop.f32.mrb[39].mxu0  ;;  %v783_v6 = vpop.f32.mrb[39].mxu1 }
 0x149   :  { %1109 = vst.msk [vmem:[%s2049_s2 + $0x4c] sm:$0xf] %vm1089_vm3, %v1347_v3  ;;  %1141 = vst.msk [vmem:[%s2049_s2 + $0xcc] sm:$0xf] %vm1089_vm3, %v1379_v4 }
 0x14c   :  { %v658_v7 = vpop.f32.mrb[40].mxu0  ;;  %v786_v8 = vpop.f32.mrb[40].mxu1 }
 0x14d   :  { %v1348_v9 = vpack.c.bf16 %v658_v7, %v658_v7  ;;  %v1380_v10 = vpack.c.bf16 %v786_v8, %v786_v8  ;;  %v660_v11 = vpop.f32.mrb[41].mxu0  ;;  %v788_v12 = vpop.f32.mrb[41].mxu1 }
 0x14e   :  { %v661_v13 = vpop.f32.mrb[42].mxu0  ;;  %v789_v14 = vpop.f32.mrb[42].mxu1 }
 0x14f   :  { %1110 = vst.msk [vmem:[%s2049_s2 + $0x50] sm:$0xf] %vm1089_vm3, %v1348_v9  ;;  %1142 = vst.msk [vmem:[%s2049_s2 + $0xd0] sm:$0xf] %vm1089_vm3, %v1380_v10  ;;  %v1349_v15 = vpack.c.bf16 %v661_v13, %v661_v13  ;;  %v1381_v16 = vpack.c.bf16 %v789_v14, %v789_v14  ;;  %v663_v17 = vpop.f32.mrb[43].mxu0  ;;  %v791_v18 = vpop.f32.mrb[43].mxu1 }
 0x151   :  { %1111 = vst.msk [vmem:[%s2049_s2 + $0x54] sm:$0xf] %vm1089_vm3, %v1349_v15  ;;  %1143 = vst.msk [vmem:[%s2049_s2 + $0xd4] sm:$0xf] %vm1089_vm3, %v1381_v16 }
 0x154   :  { %v666_v19 = vpop.f32.mrb[44].mxu0  ;;  %v794_v20 = vpop.f32.mrb[44].mxu1 }
 0x155   :  { %v1350_v21 = vpack.c.bf16 %v666_v19, %v666_v19  ;;  %v1382_v22 = vpack.c.bf16 %v794_v20, %v794_v20  ;;  %v668_v23 = vpop.f32.mrb[45].mxu0  ;;  %v796_v24 = vpop.f32.mrb[45].mxu1 }
 0x156   :  { %v669_v25 = vpop.f32.mrb[46].mxu0  ;;  %v797_v26 = vpop.f32.mrb[46].mxu1 }
 0x157   :  { %1112 = vst.msk [vmem:[%s2049_s2 + $0x58] sm:$0xf] %vm1089_vm3, %v1350_v21  ;;  %1144 = vst.msk [vmem:[%s2049_s2 + $0xd8] sm:$0xf] %vm1089_vm3, %v1382_v22  ;;  %v1351_v27 = vpack.c.bf16 %v669_v25, %v669_v25  ;;  %v1383_v28 = vpack.c.bf16 %v797_v26, %v797_v26  ;;  %v671_v29 = vpop.f32.mrb[47].mxu0  ;;  %v799_v30 = vpop.f32.mrb[47].mxu1 }
 0x159   :  { %1113 = vst.msk [vmem:[%s2049_s2 + $0x5c] sm:$0xf] %vm1089_vm3, %v1351_v27  ;;  %1145 = vst.msk [vmem:[%s2049_s2 + $0xdc] sm:$0xf] %vm1089_vm3, %v1383_v28 }
 0x15c   :  { %v674_v31 = vpop.f32.mrb[48].mxu0  ;;  %v802_v32 = vpop.f32.mrb[48].mxu1 }
 0x15d   :  { %v1352_v33 = vpack.c.bf16 %v674_v31, %v674_v31  ;;  %v1384_v34 = vpack.c.bf16 %v802_v32, %v802_v32  ;;  %v676_v35 = vpop.f32.mrb[49].mxu0  ;;  %v804_v36 = vpop.f32.mrb[49].mxu1 }
 0x15e   :  { %v677_v37 = vpop.f32.mrb[50].mxu0  ;;  %v805_v38 = vpop.f32.mrb[50].mxu1 }
 0x15f   :  { %1114 = vst.msk [vmem:[%s2049_s2 + $0x60] sm:$0xf] %vm1089_vm3, %v1352_v33  ;;  %1146 = vst.msk [vmem:[%s2049_s2 + $0xe0] sm:$0xf] %vm1089_vm3, %v1384_v34  ;;  %v1353_v39 = vpack.c.bf16 %v677_v37, %v677_v37  ;;  %v1385_v40 = vpack.c.bf16 %v805_v38, %v805_v38  ;;  %v679_v41 = vpop.f32.mrb[51].mxu0  ;;  %v807_v42 = vpop.f32.mrb[51].mxu1 }
 0x161   :  { %1115 = vst.msk [vmem:[%s2049_s2 + $0x64] sm:$0xf] %vm1089_vm3, %v1353_v39  ;;  %1147 = vst.msk [vmem:[%s2049_s2 + $0xe4] sm:$0xf] %vm1089_vm3, %v1385_v40 }
 0x164   :  { %v682_v43 = vpop.f32.mrb[52].mxu0  ;;  %v810_v44 = vpop.f32.mrb[52].mxu1 }
 0x165   :  { %v1354_v45 = vpack.c.bf16 %v682_v43, %v682_v43  ;;  %v1386_v46 = vpack.c.bf16 %v810_v44, %v810_v44  ;;  %v684_v47 = vpop.f32.mrb[53].mxu0  ;;  %v812_v48 = vpop.f32.mrb[53].mxu1 }
 0x166   :  { %v685_v49 = vpop.f32.mrb[54].mxu0  ;;  %v813_v50 = vpop.f32.mrb[54].mxu1 }
 0x167   :  { %1116 = vst.msk [vmem:[%s2049_s2 + $0x68] sm:$0xf] %vm1089_vm3, %v1354_v45  ;;  %1148 = vst.msk [vmem:[%s2049_s2 + $0xe8] sm:$0xf] %vm1089_vm3, %v1386_v46  ;;  %v1355_v51 = vpack.c.bf16 %v685_v49, %v685_v49  ;;  %v1387_v52 = vpack.c.bf16 %v813_v50, %v813_v50  ;;  %v687_v53 = vpop.f32.mrb[55].mxu0  ;;  %v815_v54 = vpop.f32.mrb[55].mxu1 }
 0x169   :  { %1117 = vst.msk [vmem:[%s2049_s2 + $0x6c] sm:$0xf] %vm1089_vm3, %v1355_v51  ;;  %1149 = vst.msk [vmem:[%s2049_s2 + $0xec] sm:$0xf] %vm1089_vm3, %v1387_v52 }
 0x16c   :  { %v690_v55 = vpop.f32.mrb[56].mxu0  ;;  %v818_v56 = vpop.f32.mrb[56].mxu1 }
 0x16d   :  { %v1356_v57 = vpack.c.bf16 %v690_v55, %v690_v55  ;;  %v1388_v58 = vpack.c.bf16 %v818_v56, %v818_v56  ;;  %v692_v59 = vpop.f32.mrb[57].mxu0  ;;  %v820_v60 = vpop.f32.mrb[57].mxu1 }
 0x16e   :  { %v693_v61 = vpop.f32.mrb[58].mxu0  ;;  %v821_v62 = vpop.f32.mrb[58].mxu1 }
 0x16f   :  { %1118 = vst.msk [vmem:[%s2049_s2 + $0x70] sm:$0xf] %vm1089_vm3, %v1356_v57  ;;  %1150 = vst.msk [vmem:[%s2049_s2 + $0xf0] sm:$0xf] %vm1089_vm3, %v1388_v58  ;;  %v1357_v63 = vpack.c.bf16 %v693_v61, %v693_v61  ;;  %v1389_v0 = vpack.c.bf16 %v821_v62, %v821_v62  ;;  %v695_v1 = vpop.f32.mrb[59].mxu0  ;;  %v823_v2 = vpop.f32.mrb[59].mxu1 }
 0x171   :  { %1119 = vst.msk [vmem:[%s2049_s2 + $0x74] sm:$0xf] %vm1089_vm3, %v1357_v63  ;;  %1151 = vst.msk [vmem:[%s2049_s2 + $0xf4] sm:$0xf] %vm1089_vm3, %v1389_v0 }
 0x174   :  { %v698_v3 = vpop.f32.mrb[60].mxu0  ;;  %v826_v4 = vpop.f32.mrb[60].mxu1 }
 0x175   :  { %v1358_v5 = vpack.c.bf16 %v698_v3, %v698_v3  ;;  %v1390_v6 = vpack.c.bf16 %v826_v4, %v826_v4  ;;  %v700_v7 = vpop.f32.mrb[61].mxu0  ;;  %v828_v8 = vpop.f32.mrb[61].mxu1 }
 0x176   :  { %v701_v9 = vpop.f32.mrb[62].mxu0  ;;  %v829_v10 = vpop.f32.mrb[62].mxu1 }
 0x177   :  { %1120 = vst.msk [vmem:[%s2049_s2 + $0x78] sm:$0xf] %vm1089_vm3, %v1358_v5  ;;  %1152 = vst.msk [vmem:[%s2049_s2 + $0xf8] sm:$0xf] %vm1089_vm3, %v1390_v6  ;;  %v1359_v11 = vpack.c.bf16 %v701_v9, %v701_v9  ;;  %v1391_v12 = vpack.c.bf16 %v829_v10, %v829_v10  ;;  %v703_v13 = vpop.f32.mrb[63].mxu0  ;;  %v831_v14 = vpop.f32.mrb[63].mxu1 }
 0x179   :  { %1121 = vst.msk [vmem:[%s2049_s2 + $0x7c] sm:$0xf] %vm1089_vm3, %v1359_v11  ;;  %1153 = vst.msk [vmem:[%s2049_s2 + $0xfc] sm:$0xf] %vm1089_vm3, %v1391_v12 }

</bundles_post_ra>
